<compile_context>
chip_gen: v7x
topology: tpu7x:2x2x1
jax: 0.10.0
libtpu: 0.0.40
codegen_flags: <defaults>
</compile_context>

<pallas_src>
import functools

import jax
import jax.numpy as jnp
from jax.experimental import pallas as pl
from jax.experimental.pallas import tpu as pltpu


def _contrastive_loss_kernel(a_ref, p_ref, n_ref, o_ref, *, margin, batch):
    tb = a_ref.shape[0]                      # rows in this batch tile

    a = a_ref[...]
    p = p_ref[...]
    n = n_ref[...]

    # Fused squared-distance difference; promote to f32 before squaring so
    # bf16 inputs stay accurate (no-op for f32 inputs).
    dap = (a - p).astype(jnp.float32)
    dan = (a - n).astype(jnp.float32)
    d = dap * dap - dan * dan                                  # (TB, D)

    # Single lane (feature-dim) reduction, keep 2-D (TB, 1) layout.
    per_row = jnp.sum(d, axis=1, keepdims=True) + margin       # (TB, 1)
    per_row = jnp.maximum(per_row, 0.0)                        # relu

    # Mask rows past the true batch size (padded portion of the last tile).
    row0 = pl.program_id(0) * tb
    row_ids = row0 + jax.lax.broadcasted_iota(jnp.int32, (tb, 1), 0)
    per_row = jnp.where(row_ids < batch, per_row, 0.0)

    # Per-tile partial sum of losses -> lane 0 of a lane-dense (1, 128) row.
    partial = jnp.sum(per_row)
    lane = jax.lax.broadcasted_iota(jnp.int32, (1, 128), 1)
    o_ref[...] = jnp.where(lane == 0, partial, 0.0)


def _choose_tile_rows(batch, dim, itemsize,
                      max_rows=1024, block_bytes_budget=2 * 1024 * 1024):
    """Pick a batch-tile row count: multiple of 8, <= padded batch, and small
    enough that 3 inputs x 2 pipeline buffers stay under ~12 MiB of VMEM."""
    rows_by_budget = max(8, (block_bytes_budget // max(1, dim * itemsize)) // 8 * 8)
    b_pad = ((batch + 7) // 8) * 8
    return max(8, min(max_rows, rows_by_budget, b_pad))


def contrastive_loss(anchor, positive, negative, margin: float = 0.5,
                     tile_rows: int | None = None):
    """Forward pass of ContrastiveLoss via a single tiled Pallas kernel.

    anchor, positive, negative: (B, D) arrays. Returns a float32 scalar.
    """
    assert anchor.shape == positive.shape == negative.shape
    assert anchor.ndim == 2
    B, D = anchor.shape
    itemsize = jnp.dtype(anchor.dtype).itemsize

    if tile_rows is None:
        tile_rows = _choose_tile_rows(B, D, itemsize)
    tb = int(tile_rows)
    assert tb % 8 == 0, "tile_rows must be a multiple of 8 (sublane tiling)"
    grid = pl.cdiv(B, tb)

    kernel = functools.partial(
        _contrastive_loss_kernel, margin=float(margin), batch=B)

    partials = pl.pallas_call(
        kernel,
        out_shape=jax.ShapeDtypeStruct((grid, 128), jnp.float32),
        grid_spec=pltpu.PrefetchScalarGridSpec(
            num_scalar_prefetch=0,
            grid=(grid,),
            in_specs=[
                pl.BlockSpec((tb, D), lambda i: (i, 0)),
                pl.BlockSpec((tb, D), lambda i: (i, 0)),
                pl.BlockSpec((tb, D), lambda i: (i, 0)),
            ],
            out_specs=pl.BlockSpec((1, 128), lambda i: (i, 0)),
        ),
        compiler_params=pltpu.CompilerParams(
            # Independent batch tiles -> megacore sharding on v7x.
            dimension_semantics=("parallel",),
            # >= usage (~12 MiB worst case) and <= every chip's physical VMEM.
            vmem_limit_bytes=32 * 1024 * 1024,
        ),
        cost_estimate=pl.CostEstimate(
            flops=7 * B * D,
            transcendentals=0,
            bytes_accessed=3 * B * D * itemsize + grid * 128 * 4,
        ),
    )(anchor, positive, negative)

    # Tiny epilogue: lane 0 of each row holds a tile's partial loss sum.
    return jnp.sum(partials) / B


def _reference_loss(anchor, positive, negative, margin: float = 0.5):
    dp = jnp.sum((anchor - positive) ** 2, axis=1)
    dn = jnp.sum((anchor - negative) ** 2, axis=1)
    return jnp.mean(jnp.maximum(dp - dn + margin, 0.0))


if __name__ == "__main__":
    key = jax.random.PRNGKey(0)
    k_a, k_p, k_n = jax.random.split(key, 3)

    # Config 1: small embedding batch, single tile (default tiling).
    B, D = 64, 32
    anchor = jax.random.normal(k_a, (B, D), dtype=jnp.float32)
    positive = jax.random.normal(k_p, (B, D), dtype=jnp.float32)
    negative = jax.random.normal(k_n, (B, D), dtype=jnp.float32)

    loss = jax.block_until_ready(contrastive_loss(anchor, positive, negative, 0.5))
    ref = jax.block_until_ready(_reference_loss(anchor, positive, negative, 0.5))
    assert jnp.allclose(loss, ref, rtol=1e-5, atol=1e-5), (loss, ref)

    # Config 2: ragged batch with a multi-step grid (exercises the pipeline
    # and the padded-row masking on the last tile).
    B2, D2 = 52, 32
    a2 = jax.random.normal(k_a, (B2, D2), dtype=jnp.float32)
    p2 = jax.random.normal(k_p, (B2, D2), dtype=jnp.float32)
    n2 = jax.random.normal(k_n, (B2, D2), dtype=jnp.float32)
    loss2 = jax.block_until_ready(
        contrastive_loss(a2, p2, n2, 0.5, tile_rows=16))
    ref2 = jax.block_until_ready(_reference_loss(a2, p2, n2, 0.5))
    assert jnp.allclose(loss2, ref2, rtol=1e-5, atol=1e-5), (loss2, ref2)

    print("KERNEL_OK")
</pallas_src>

<mosaic_0001>
module attributes {stable_mosaic.version = 11 : i64} {
  func.func @_contrastive_loss_kernel(%arg0: i32, %arg1: memref<64x32xf32, #tpu.memory_space<vmem>>, %arg2: memref<64x32xf32, #tpu.memory_space<vmem>>, %arg3: memref<64x32xf32, #tpu.memory_space<vmem>>, %arg4: memref<1x128xf32, #tpu.memory_space<vmem>>) attributes {dimension_semantics = [#tpu.dimension_semantics<parallel>], iteration_bounds = array<i64: 1>, scalar_prefetch = 0 : i64, scratch_operands = 0 : i64, tpu.core_type = #tpu.core_type<tc>, window_params = [{transform_indices = @transform_0, window_bounds = array<i64: 64, 32>}, {transform_indices = @transform_1, window_bounds = array<i64: 64, 32>}, {transform_indices = @transform_2, window_bounds = array<i64: 64, 32>}, {transform_indices = @transform_3, window_bounds = array<i64: 1, 128>}]} {
    %c0 = arith.constant 0 : index
    %c0_0 = arith.constant 0 : index
    %0 = vector.load %arg1[%c0, %c0_0] : memref<64x32xf32, #tpu.memory_space<vmem>>, vector<64x32xf32>
    %c0_1 = arith.constant 0 : index
    %c0_2 = arith.constant 0 : index
    %1 = vector.load %arg2[%c0_1, %c0_2] : memref<64x32xf32, #tpu.memory_space<vmem>>, vector<64x32xf32>
    %c0_3 = arith.constant 0 : index
    %c0_4 = arith.constant 0 : index
    %2 = vector.load %arg3[%c0_3, %c0_4] : memref<64x32xf32, #tpu.memory_space<vmem>>, vector<64x32xf32>
    %3 = arith.subf %0, %1 : vector<64x32xf32>
    %4 = arith.subf %0, %2 : vector<64x32xf32>
    %5 = arith.mulf %3, %3 : vector<64x32xf32>
    %6 = arith.mulf %4, %4 : vector<64x32xf32>
    %7 = arith.subf %5, %6 : vector<64x32xf32>
    %cst = arith.constant dense<0.000000e+00> : vector<64xf32>
    %8 = vector.multi_reduction <add>, %7, %cst [1] : vector<64x32xf32> to vector<64xf32>
    %9 = vector.shape_cast %8 : vector<64xf32> to vector<64x1xf32>
    %cst_5 = arith.constant 5.000000e-01 : f32
    %10 = vector.broadcast %cst_5 : f32 to vector<64x1xf32>
    %11 = arith.addf %9, %10 : vector<64x1xf32>
    %cst_6 = arith.constant 0.000000e+00 : f32
    %12 = vector.broadcast %cst_6 : f32 to vector<64x1xf32>
    %13 = arith.maximumf %11, %12 : vector<64x1xf32>
    %c64_i32 = arith.constant 64 : i32
    %14 = arith.muli %arg0, %c64_i32 : i32
    %15 = tpu.iota {dimensions = array<i32: 0>} : vector<64x1xi32>
    %16 = vector.broadcast %14 : i32 to vector<64x1xi32>
    %17 = arith.addi %16, %15 : vector<64x1xi32>
    %c64_i32_7 = arith.constant 64 : i32
    %18 = vector.broadcast %c64_i32_7 : i32 to vector<64x1xi32>
    %19 = arith.cmpi slt, %17, %18 : vector<64x1xi32>
    %cst_8 = arith.constant 0.000000e+00 : f32
    %20 = vector.broadcast %cst_8 : f32 to vector<64x1xf32>
    %21 = arith.select %19, %13, %20 : vector<64x1xi1>, vector<64x1xf32>
    %22 = vector.shape_cast %21 : vector<64x1xf32> to vector<1x64x1xf32>
    %cst_9 = arith.constant dense<0.000000e+00> : vector<1xf32>
    %23 = vector.multi_reduction <add>, %22, %cst_9 [1, 2] : vector<1x64x1xf32> to vector<1xf32>
    %24 = vector.shape_cast %23 : vector<1xf32> to vector<1x1x1xf32>
    %25 = vector.extract %24[0, 0, 0] : f32 from vector<1x1x1xf32>
    %26 = tpu.iota {dimensions = array<i32: 1>} : vector<1x128xi32>
    %c0_i32 = arith.constant 0 : i32
    %27 = vector.broadcast %c0_i32 : i32 to vector<1x128xi32>
    %28 = arith.cmpi eq, %26, %27 : vector<1x128xi32>
    %cst_10 = arith.constant 0.000000e+00 : f32
    %29 = vector.broadcast %25 : f32 to vector<1x128xf32>
    %30 = vector.broadcast %cst_10 : f32 to vector<1x128xf32>
    %31 = arith.select %28, %29, %30 : vector<1x128xi1>, vector<1x128xf32>
    %c0_11 = arith.constant 0 : index
    %c0_12 = arith.constant 0 : index
    %32 = vector.load %arg4[%c0_11, %c0_12] : memref<1x128xf32, #tpu.memory_space<vmem>>, vector<1x128xf32>
    tpu.vector_store %arg4[%c0_11, %c0_12], %31 {strides = array<i32>} : memref<1x128xf32, #tpu.memory_space<vmem>>, vector<1x128xf32>,
    return
  }
  func.func @transform_0(%arg0: i32) -> (i32, i32) {
    %c0_i32 = arith.constant 0 : i32
    %c0_i32_0 = arith.constant 0 : i32
    return %arg0, %c0_i32 : i32, i32
  }
  func.func @transform_1(%arg0: i32) -> (i32, i32) {
    %c0_i32 = arith.constant 0 : i32
    %c0_i32_0 = arith.constant 0 : i32
    return %arg0, %c0_i32 : i32, i32
  }
  func.func @transform_2(%arg0: i32) -> (i32, i32) {
    %c0_i32 = arith.constant 0 : i32
    %c0_i32_0 = arith.constant 0 : i32
    return %arg0, %c0_i32 : i32, i32
  }
  func.func @transform_3(%arg0: i32) -> (i32, i32) {
    %c0_i32 = arith.constant 0 : i32
    %c0_i32_0 = arith.constant 0 : i32
    return %arg0, %c0_i32 : i32, i32
  }
}

</mosaic_0001>

<bundles_post_ra>
// kernel: tpu_custom_call.1
= control target key start
LH: loop header
LB: loop body
LE: loop exit
PB: predicated region body
PF: predicated region fallthrough
CT: control target
= control target key end

     0   :  { %vm79_vm0 = vcmask 261120   ;;  %s348_s0 = inlined_call_operand.vmem [shape: f32[64,32], index: 0, kind: input, shape index: {}]   ;;  %s349_s1 = inlined_call_operand.vmem [shape: f32[64,32], index: 1, kind: input, shape index: {}]   ;;  %s350_s2 = inlined_call_operand.vmem [shape: f32[64,32], index: 2, kind: input, shape index: {}]   ;;  %s351_s3 = inlined_call_operand.hbm [shape: f32[1,128], index: 3, kind: output, shape index: {}]  }
   0x1   :  { %v15_v0 = vld [vmem:[%s348_s0] sm:$0xff]  ;;  %v17_v5 = vld [vmem:[%s348_s0 + $0x10] sm:$0xff]  ;;  %v16_v10 = vld [vmem:[%s348_s0 + $0x8] sm:$0xff] }
   0x2   :  { %v23_v1 = vld [vmem:[%s349_s1] sm:$0xff]  ;;  %v25_v6 = vld [vmem:[%s349_s1 + $0x10] sm:$0xff]  ;;  %v24_v11 = vld [vmem:[%s349_s1 + $0x8] sm:$0xff] }
   0x3   :  { %v31_v2 = vld [vmem:[%s350_s2] sm:$0xff]  ;;  %v39_v3 = vsub.f32 %v15_v0, %v23_v1  ;;  %v33_v7 = vld [vmem:[%s350_s2 + $0x10] sm:$0xff]  ;;  %v41_v8 = vsub.f32 %v17_v5, %v25_v6  ;;  %v32_v12 = vld [vmem:[%s350_s2 + $0x8] sm:$0xff]  ;;  %v40_v15 = vsub.f32 %v16_v10, %v24_v11 }
   0x4   :  { %v47_v4 = vsub.f32 %v15_v0, %v31_v2  ;;  %v49_v9 = vsub.f32 %v17_v5, %v33_v7  ;;  %v48_v16 = vsub.f32 %v16_v10, %v32_v12  ;;  %v18_v17 = vld [vmem:[%s348_s0 + $0x18] sm:$0xff]  ;;  %v19_v24 = vld [vmem:[%s348_s0 + $0x20] sm:$0xff]  ;;  %v20_v31 = vld [vmem:[%s348_s0 + $0x28] sm:$0xff] }
   0x5   :  { %v55_v13 = vmul.f32 %v39_v3, %v39_v3  ;;  %v26_v18 = vld [vmem:[%s349_s1 + $0x18] sm:$0xff]  ;;  %v57_v20 = vmul.f32 %v41_v8, %v41_v8  ;;  %v27_v25 = vld [vmem:[%s349_s1 + $0x20] sm:$0xff]  ;;  %v56_v28 = vmul.f32 %v40_v15, %v40_v15  ;;  %v28_v32 = vld [vmem:[%s349_s1 + $0x28] sm:$0xff] }
   0x6   :  { %v63_v14 = vmul.f32 %v47_v4, %v47_v4  ;;  %v34_v19 = vld [vmem:[%s350_s2 + $0x18] sm:$0xff]  ;;  %v65_v21 = vmul.f32 %v49_v9, %v49_v9  ;;  %v42_v22 = vsub.f32 %v18_v17, %v26_v18  ;;  %v35_v26 = vld [vmem:[%s350_s2 + $0x20] sm:$0xff]  ;;  %v64_v29 = vmul.f32 %v48_v16, %v48_v16  ;;  %v36_v33 = vld [vmem:[%s350_s2 + $0x28] sm:$0xff] }
   0x7   :  { %v50_v23 = vsub.f32 %v18_v17, %v34_v19  ;;  %v43_v30 = vsub.f32 %v19_v24, %v27_v25  ;;  %v51_v37 = vsub.f32 %v19_v24, %v35_v26  ;;  %v21_v38 = vld [vmem:[%s348_s0 + $0x30] sm:$0xff]  ;;  %v44_v44 = vsub.f32 %v20_v31, %v28_v32  ;;  %v22_v45 = vld [vmem:[%s348_s0 + $0x38] sm:$0xff] }
   0x8   :  { %v71_v27 = vsub.f32 %v55_v13, %v63_v14  ;;  %v73_v34 = vsub.f32 %v57_v20, %v65_v21  ;;  %v58_v35 = vmul.f32 %v42_v22, %v42_v22  ;;  %v29_v39 = vld [vmem:[%s349_s1 + $0x30] sm:$0xff]  ;;  %v72_v42 = vsub.f32 %v56_v28, %v64_v29  ;;  %v30_v46 = vld [vmem:[%s349_s1 + $0x38] sm:$0xff] }
   0x9   :  { %v66_v36 = vmul.f32 %v50_v23, %v50_v23  ;;  %v37_v40 = vld [vmem:[%s350_s2 + $0x30] sm:$0xff]  ;;  %v59_v43 = vmul.f32 %v43_v30, %v43_v30  ;;  %v67_v49 = vmul.f32 %v51_v37, %v51_v37  ;;  %v52_v50 = vsub.f32 %v20_v31, %v36_v33  ;;  %v38_v51 = vld [vmem:[%s350_s2 + $0x38] sm:$0xff] }
   0xa   :  { %v80_v41 = vsel %vm79_vm0, %v71_v27, 0.0  ;;  %v86_v47 = vsel %vm79_vm0, %v73_v34, 0.0 }
   0xb   :  { %81 = vadd.xlane.f32.xlu0 %v80_v41  ;;  %v74_v48 = vsub.f32 %v58_v35, %v66_v36 }
   0xc   :  { %8 = vsyncpa [#allocation3], 0  ;;  %87 = vadd.xlane.f32.xlu1 %v86_v47  ;;  %v83_v52 = vsel %vm79_vm0, %v72_v42, 0.0  ;;  %v60_v53 = vmul.f32 %v44_v44, %v44_v44  ;;  %v45_v54 = vsub.f32 %v21_v38, %v29_v39  ;;  %v53_v55 = vsub.f32 %v21_v38, %v37_v40  ;;  %s227_s0 = smov [#allocation2]  }
   0xd   :  { %v89_v56 = vsel %vm79_vm0, %v74_v48, 0.0  ;;  %v75_v57 = vsub.f32 %v59_v43, %v67_v49  ;;  %v68_v58 = vmul.f32 %v52_v50, %v52_v50  ;;  %v46_v59 = vsub.f32 %v22_v45, %v30_v46  ;;  %s192_s1 = sshll.u32 %s227_s0, 4  ;;  %s193_s1 = int_to_ptr.vmem [resolvable:$true] %s192_s1 }
   0xe   :  { %v61_v60 = vmul.f32 %v45_v54, %v45_v54  ;;  %v69_v61 = vmul.f32 %v53_v55, %v53_v55  ;;  %v54_v62 = vsub.f32 %v22_v45, %v38_v51  ;;  %vm155_vm1 = vcmask 7168   ;;  %s203_s6 = scalar_lea.vmem %s193_s1, 16  ;;  %s207_s7 = scalar_lea.vmem %s193_s1, 32 }
   0xf   :  { %84 = vadd.xlane.f32.xlu0 %v83_v52  ;;  %v76_v63 = vsub.f32 %v60_v53, %v68_v58  ;;  %v62_v0 = vmul.f32 %v46_v59, %v46_v59  ;;  %v92_v1 = vsel %vm79_vm0, %v75_v57, 0.0  ;;  %v180_v54 = vlaneseq  ;;  %p204_p0 = scmp.ne.s32.totalorder %s193_s1, %s203_s6  ;;  %p208_p1 = scmp.lt.s32.totalorder %s193_s1, %s193_s1 }
  0x10   :  { %90 = vadd.xlane.f32.xlu1 %v89_v56  ;;  %v77_v2 = vsub.f32 %v61_v60, %v69_v61  ;;  %v70_v3 = vmul.f32 %v54_v62, %v54_v62  ;;  %p209_p2 = scmp.lt.s32.totalorder %s207_s7, %s203_s6 }
  0x11   :  { %v95_v4 = vsel %vm79_vm0, %v76_v63, 0.0  ;;  %v181_v55 = vand.u32 127, %v180_v54 }
  0x12   :  { %v78_v5 = vsub.f32 %v62_v0, %v70_v3  ;;  %v98_v6 = vsel %vm79_vm0, %v77_v2, 0.0  ;;  %p210_p3 = por %p209_p2, %p208_p1 }
  0x13   :  { %93 = vadd.xlane.f32.xlu0 %v92_v1  ;;  %vm182_vm2 = vcmp.eq.s32.totalorder %v181_v55, 0 }
  0x14   :  { %96 = vadd.xlane.f32.xlu1 %v95_v4  ;;  %v101_v7 = vsel %vm79_vm0, %v78_v5, 0.0  ;;  %p211_p4 = pnand %p210_p3, %p204_p0 }
  0x17   :  { %99 = vadd.xlane.f32.xlu0 %v98_v6 }
  0x18   :  { %102 = vadd.xlane.f32.xlu1 %v101_v7 }
  0x98   :  { %v82_v8 = vpop.xlane.xlu0 %81 }
  0x99   :  { %v104_v9 = vadd.f32 0.5, %v82_v8  ;;  %v88_v10 = vpop.xlane.xlu1 %87 }
  0x9a   :  { %v106_v11 = vadd.f32 0.5, %v88_v10 }
  0x9b   :  { %v112_v13 = vmax.f32 %v104_v9, 0.0 }
  0x9c   :  { %v85_v12 = vpop.xlane.xlu0 %84  ;;  %v114_v17 = vmax.f32 %v106_v11, 0.0 }
  0x9d   :  { %v105_v14 = vadd.f32 0.5, %v85_v12  ;;  %v91_v15 = vpop.xlane.xlu1 %90  ;;  %v156_v21 = vsel %vm155_vm1, %v112_v13, 0.0 }
  0x9e   :  { %v107_v16 = vadd.f32 0.5, %v91_v15  ;;  %v159_v27 = vsel %vm155_vm1, %v114_v17, 0.0 }
  0x9f   :  { %v113_v18 = vmax.f32 %v105_v14, 0.0 }
  0xa0   :  { %v115_v19 = vmax.f32 %v107_v16, 0.0  ;;  %v94_v20 = vpop.xlane.xlu0 %93 }
  0xa1   :  { %v157_v22 = vsel %vm155_vm1, %v113_v18, 0.0  ;;  %v108_v23 = vadd.f32 0.5, %v94_v20  ;;  %v97_v24 = vpop.xlane.xlu1 %96 }
  0xa2   :  { %v158_v25 = vadd.f32 %v157_v22, %v156_v21  ;;  %v109_v26 = vadd.f32 0.5, %v97_v24  ;;  %v161_v28 = vsel %vm155_vm1, %v115_v19, 0.0 }
  0xa3   :  { %v116_v29 = vmax.f32 %v108_v23, 0.0 }
  0xa4   :  { %v160_v30 = vadd.f32 %v159_v27, %v158_v25  ;;  %v117_v31 = vmax.f32 %v109_v26, 0.0  ;;  %v100_v32 = vpop.xlane.xlu0 %99 }
  0xa5   :  { %v163_v33 = vsel %vm155_vm1, %v116_v29, 0.0  ;;  %v110_v34 = vadd.f32 0.5, %v100_v32  ;;  %v103_v35 = vpop.xlane.xlu1 %102 }
  0xa6   :  { %v162_v36 = vadd.f32 %v161_v28, %v160_v30  ;;  %v111_v37 = vadd.f32 0.5, %v103_v35  ;;  %v165_v38 = vsel %vm155_vm1, %v117_v31, 0.0 }
  0xa7   :  { %v118_v39 = vmax.f32 %v110_v34, 0.0 }
  0xa8   :  { %v164_v40 = vadd.f32 %v163_v33, %v162_v36  ;;  %v119_v41 = vmax.f32 %v111_v37, 0.0 }
  0xa9   :  { %v167_v42 = vsel %vm155_vm1, %v118_v39, 0.0 }
  0xaa   :  { %v166_v43 = vadd.f32 %v165_v38, %v164_v40  ;;  %v169_v44 = vsel %vm155_vm1, %v119_v41, 0.0 }
  0xac   :  { %v168_v45 = vadd.f32 %v167_v42, %v166_v43 }
  0xae   :  { %v170_v46 = vadd.f32 %v169_v44, %v168_v45 }
  0xb0   :  { %171 = vadd.xlane.f32.xlu0 %v170_v46 }
 0x13d   :  { %v172_v47 = vpop.xlane.xlu0 %171 }
 0x13e   :  { %v173_v48 = vrot.slane %v172_v47, 4 }
 0x140   :  { %v174_v49 = vadd.f32 %v173_v48, %v172_v47 }
 0x142   :  { %v175_v50 = vrot.slane %v174_v49, 2 }
 0x144   :  { %v176_v51 = vadd.f32 %v175_v50, %v174_v49 }
 0x146   :  { %v177_v52 = vrot.slane %v176_v51, 1 }
 0x148   :  { %v178_v53 = vadd.f32 %v177_v52, %v176_v51 }
 0x14a   :  { %200 = vpush %v178_v53 }
 0x17b   :  { %s201_s2 = spop %200 }
 0x17c   :  { %v183_v56 = vstv %s201_s2 }
 0x17d   :  { %v184_v57 = vsel %vm182_vm2, %v183_v56, 0.0 }
 0x17e   :  { %185 = vst [vmem:[#allocation2] sm:$0x1] %v184_v57 }
 0x17f   :  { %214 = shalt.err (!%p211_p4)
}
 0x180   :  { %s215_s10 = scalar_lea.hbm %s351_s3, 16 }
 0x181   :  { %p216_p5 = scmp.ne.s32.totalorder %s351_s3, %s215_s10  ;;  %p219_p6 = scmp.lt.u32.totalorder %s215_s10, %s351_s3 }
 0x183   :  { %p221_p7 = pnand %p219_p6, %p216_p5 }
 0x185   :  { %224 = shalt.err (!%p221_p7)
}
 0x186   :  { %195 = dma.vmem_to_hbm [thread:$0]  %s193_s1, 16, %s351_s3, [#allocation3]  }
 0x187   :  { %225 = dma.done.wait [#allocation3], 16  }
 0x188   :  { %226 = vsyncadd [#allocation3], 4294967280 }
 0x189   :  { %199 = vsyncpa [#allocation3], 1 }

</bundles_post_ra>
